<compile_context>
chip_gen: v7x
topology: tpu7x:2x2x1
jax: 0.10.0
libtpu: 0.0.40
codegen_flags: <defaults>
</compile_context>

<pallas_src>
import math
from functools import partial

import jax
import jax.numpy as jnp
from jax import lax
from jax.experimental import pallas as pl
from jax.experimental.pallas import tpu as pltpu

EPS = 1e-5


def _cdiv(a, b):
    return -(-a // b)


# --------------------------------------------------------------------------- #
# Generation-aware VMEM budgeting & tile selection
# --------------------------------------------------------------------------- #
def _vmem_budget_bytes():
    """VMEM budget by chip generation (v7x only has 64 MiB physical VMEM)."""
    phys = None
    try:
        info = pltpu.get_tpu_info()
        phys = getattr(info, "vmem_capacity_bytes", None)
    except Exception:
        phys = None
    if phys is None or phys <= 64 * 1024 * 1024:
        return 48 * 1024 * 1024          # v7x (64 MiB physical) or unknown -> conservative
    return 96 * 1024 * 1024              # v5e / v6e (128 MiB physical)


def _pick_tile_m(M, Cin, Cout, budget_bytes):
    """Largest pixel tile whose double-buffered working set fits the budget.

    Among the tiles that fit, prefer the largest that still gives a grid of
    >= 2 steps so the "parallel" pixel axis can split across the two
    TensorCores on v7x; otherwise take the smallest candidate (minimal padding).
    """
    def workset(tm):
        b = Cout * 9 * Cout * 2 + Cout * Cin * 2     # resident weights (bf16)
        b += (9 * Cout + Cin) * tm * 2               # patch + shortcut input blocks (bf16)
        b += 2 * Cout * tm * 2 + Cout * 4 * 4        # y2/sc output blocks (bf16) + stats
        b += Cout * tm * 4                           # finalize f32 output block
        return 2 * b                                 # double buffering

    cands = [t for t in (4096, 2048, 1024, 512, 256, 128)
             if workset(t) <= budget_bytes // 2]
    if not cands:
        cands = [128]
    good = [t for t in cands if _cdiv(M, t) >= 2]
    return good[0] if good else cands[-1]


# --------------------------------------------------------------------------- #
# Kernels
# --------------------------------------------------------------------------- #
def _stats_cols(ys, Cout):
    """Per-channel partial BN stats for a list of (Cout, tm) f32 tiles.

    Returns (Cout, 2*len(ys)) with columns [sum_0, sumsq_0, sum_1, sumsq_1,...].
    Kept in (Cout, k) orientation (known-good lowering); the store is tiny.
    """
    ncol = 2 * len(ys)
    col = lax.broadcasted_iota(jnp.int32, (Cout, ncol), 1)
    out = jnp.zeros((Cout, ncol), jnp.float32)
    for i, y in enumerate(ys):
        s = jnp.sum(y, axis=1, keepdims=True)        # (Cout, 1)
        ss = jnp.sum(y * y, axis=1, keepdims=True)   # (Cout, 1)
        out = jnp.where(col == 2 * i, s, out)
        out = jnp.where(col == 2 * i + 1, ss, out)
    return out


def _conv_stats_kernel(Cout, wT_ref, pT_ref, yT_ref, stats_ref):
    """One im2col matmul; bf16 store of the result; f32 partial BN stats."""
    y = jnp.dot(wT_ref[...], pT_ref[...], preferred_element_type=jnp.float32)
    yT_ref[...] = y.astype(yT_ref.dtype)                    # bf16, lane-dense
    stats_ref[...] = _stats_cols([y], Cout)[None]           # (1, Cout, 2) f32


def _conv_stats_sc_kernel(Cout, w2T_ref, wscT_ref, p2T_ref, xsT_ref,
                          y2T_ref, scT_ref, stats_ref):
    """Conv2 matmul + 1x1 shortcut matmul; bf16 stores; merged f32 stats."""
    y2 = jnp.dot(w2T_ref[...], p2T_ref[...], preferred_element_type=jnp.float32)
    y2T_ref[...] = y2.astype(y2T_ref.dtype)
    sc = jnp.dot(wscT_ref[...], xsT_ref[...], preferred_element_type=jnp.float32)
    scT_ref[...] = sc.astype(scT_ref.dtype)
    stats_ref[...] = _stats_cols([y2, sc], Cout)[None]      # (1, Cout, 4) f32


def _finalize_kernel(coeff_ref, y2T_ref, resT_ref, outT_ref):
    """Phase 2: BN2 + BN_shortcut (or identity) + residual add + ReLU (f32 math)."""
    c = coeff_ref[...]                          # (Cout, 4): [scale2, shift2, scale_r, shift_r]
    y2 = y2T_ref[...].astype(jnp.float32)       # (Cout, tm)
    r = resT_ref[...].astype(jnp.float32)       # (Cout, tm)
    h2 = y2 * c[:, 0:1] + c[:, 1:2]
    sc = r * c[:, 2:3] + c[:, 3:4]
    outT_ref[...] = jnp.maximum(h2 + sc, 0.0)


# --------------------------------------------------------------------------- #
# pallas_call wrappers
# --------------------------------------------------------------------------- #
def _compiler_params(budget):
    return pltpu.CompilerParams(
        dimension_semantics=("parallel",),      # pixel tiles are independent
        vmem_limit_bytes=budget,
    )


def _conv_stats_call(wT, pT, Cout, Mp, tm, budget):
    G = Mp // tm
    K = wT.shape[1]
    return pl.pallas_call(
        partial(_conv_stats_kernel, Cout),
        grid=(G,),
        in_specs=[
            pl.BlockSpec((Cout, K), lambda i: (0, 0)),
            pl.BlockSpec((K, tm), lambda i: (0, i)),
        ],
        out_specs=(
            pl.BlockSpec((Cout, tm), lambda i: (0, i)),
            pl.BlockSpec((1, Cout, 2), lambda i: (i, 0, 0)),
        ),
        out_shape=(
            jax.ShapeDtypeStruct((Cout, Mp), jnp.bfloat16),
            jax.ShapeDtypeStruct((G, Cout, 2), jnp.float32),
        ),
        compiler_params=_compiler_params(budget),
    )(wT, pT)


def _conv_stats_sc_call(w2T, wscT, p2T, xsT, Cout, Mp, tm, budget):
    G = Mp // tm
    K2 = w2T.shape[1]
    Cin = wscT.shape[1]
    return pl.pallas_call(
        partial(_conv_stats_sc_kernel, Cout),
        grid=(G,),
        in_specs=[
            pl.BlockSpec((Cout, K2), lambda i: (0, 0)),
            pl.BlockSpec((Cout, Cin), lambda i: (0, 0)),
            pl.BlockSpec((K2, tm), lambda i: (0, i)),
            pl.BlockSpec((Cin, tm), lambda i: (0, i)),
        ],
        out_specs=(
            pl.BlockSpec((Cout, tm), lambda i: (0, i)),
            pl.BlockSpec((Cout, tm), lambda i: (0, i)),
            pl.BlockSpec((1, Cout, 4), lambda i: (i, 0, 0)),
        ),
        out_shape=(
            jax.ShapeDtypeStruct((Cout, Mp), jnp.bfloat16),
            jax.ShapeDtypeStruct((Cout, Mp), jnp.bfloat16),
            jax.ShapeDtypeStruct((G, Cout, 4), jnp.float32),
        ),
        compiler_params=_compiler_params(budget),
    )(w2T, wscT, p2T, xsT)


def _finalize_call(coeff, y2T, resT, Cout, Mp, tm, budget):
    G = Mp // tm
    return pl.pallas_call(
        _finalize_kernel,
        grid=(G,),
        in_specs=[
            pl.BlockSpec((Cout, 4), lambda i: (0, 0)),
            pl.BlockSpec((Cout, tm), lambda i: (0, i)),
            pl.BlockSpec((Cout, tm), lambda i: (0, i)),
        ],
        out_specs=pl.BlockSpec((Cout, tm), lambda i: (0, i)),
        out_shape=jax.ShapeDtypeStruct((Cout, Mp), jnp.float32),
        compiler_params=_compiler_params(budget),
    )(coeff, y2T, resT)


# --------------------------------------------------------------------------- #
# Wrapper-side layout plumbing (XLA) — all channel-first, bf16
# --------------------------------------------------------------------------- #
def _im2col_cf(x_cnhw, stride):
    """3x3, pad=1 im2col from a channel-first (C, N, H, W) slab.

    Returns (9*C, N*Ho*Wo) in the input dtype; K index = (ky*3+kx)*C + c.
    Built channel-first so no (M, C) <-> (C, M) transposes are materialized.
    """
    C, N, H, W = x_cnhw.shape
    Ho = (H + 2 - 3) // stride + 1
    Wo = (W + 2 - 3) // stride + 1
    xp = jnp.pad(x_cnhw, ((0, 0), (0, 0), (1, 1), (1, 1)))
    taps = []
    for ky in range(3):
        for kx in range(3):
            p = xp[:, :, ky:ky + stride * (Ho - 1) + 1:stride,
                         kx:kx + stride * (Wo - 1) + 1:stride]
            taps.append(p.reshape(C, N * Ho * Wo))
    return jnp.concatenate(taps, axis=0), (Ho, Wo)


def _bn_scale_shift(stats_partial, M_true, gamma, beta):
    """Turn per-tile [sum, sumsq] partials into BN scale/shift.

    Divides by the TRUE pixel count (padded zero pixels contribute 0 to both
    sums, so BN stays exact). var = E[x^2]-E[x]^2 in f32, clamped at 0.
    TODO(synk): switch to a shifted-mean / Welford accumulation if used beyond
    the bf16-level test tolerance (catastrophic cancellation when |mean|>>std).
    """
    s = jnp.sum(stats_partial, axis=0)             # (Cout, 2)
    mean = s[:, 0] / M_true
    var = jnp.maximum(s[:, 1] / M_true - mean * mean, 0.0)
    scale = gamma * lax.rsqrt(var + EPS)
    shift = beta - mean * scale
    return scale, shift


@partial(jax.jit, static_argnames=("half_res",))
def simple_block_forward(x_nchw, params, half_res):
    """x_nchw: (N, Cin, H, W) float32 (PyTorch layout). Returns (N, Cout, Ho, Wo)."""
    N, Cin, H, W = x_nchw.shape
    Cout = params["w1"].shape[0]
    stride = 2 if half_res else 1
    shortcut_1x1 = Cin != Cout

    budget = _vmem_budget_bytes()

    # Channel-first bf16 view of the input; all subsequent layout work stays
    # channel-first (MXU operands are bf16; accumulation/VPU math stays f32).
    xT = jnp.transpose(x_nchw, (1, 0, 2, 3)).astype(jnp.bfloat16)    # (Cin, N, H, W)

    # ---- layout prep: im2col (+ stride handling) done once, outside kernels --
    p1T, (Ho, Wo) = _im2col_cf(xT, stride)                           # (9*Cin, M) bf16
    M = N * Ho * Wo
    tm = _pick_tile_m(M, Cin, Cout, budget)
    G = _cdiv(M, tm)
    Mp = G * tm                                                      # padded pixel count

    def pad_m(a):
        return a if a.shape[1] == Mp else jnp.pad(a, ((0, 0), (0, Mp - a.shape[1])))

    p1T = pad_m(p1T)

    # PyTorch conv weight (Cout, Cin, kh, kw) -> (Cout, 9*Cin) matching im2col K order
    w1T = jnp.transpose(params["w1"], (0, 2, 3, 1)).reshape(Cout, 9 * Cin).astype(jnp.bfloat16)
    w2T = jnp.transpose(params["w2"], (0, 2, 3, 1)).reshape(Cout, 9 * Cout).astype(jnp.bfloat16)

    # ---- phase 1a: conv1 (single MXU matmul) + fused partial BN1 stats -------
    y1T, st1 = _conv_stats_call(w1T, p1T, Cout, Mp, tm, budget)      # y1T bf16, st1 f32

    # BN1 finalize + ReLU: cheap per-channel affine in the wrapper (stats are
    # only complete after all tiles); math in f32, result cast to bf16 patches.
    scale1, shift1 = _bn_scale_shift(st1, M, params["g1"], params["b1"])
    h1T = jnp.maximum(y1T[:, :M].astype(jnp.float32) * scale1[:, None]
                      + shift1[:, None], 0.0)
    h1_cf = h1T.astype(jnp.bfloat16).reshape(Cout, N, Ho, Wo)        # free reshape
    p2T, _ = _im2col_cf(h1_cf, 1)                                    # (9*Cout, M) bf16
    p2T = pad_m(p2T)

    # shortcut input: strided center tap, channel-first, extracted once
    xsT = pad_m(xT[:, :, ::stride, ::stride].reshape(Cin, M))        # (Cin, Mp) bf16

    # ---- phase 1b: conv2 (+ optional 1x1 shortcut) + fused partial stats -----
    if shortcut_1x1:
        wscT = params["wsc"].reshape(Cout, Cin).astype(jnp.bfloat16)
        y2T, scT, st = _conv_stats_sc_call(w2T, wscT, p2T, xsT, Cout, Mp, tm, budget)
        scale2, shift2 = _bn_scale_shift(st[..., 0:2], M, params["g2"], params["b2"])
        scale_sc, shift_sc = _bn_scale_shift(st[..., 2:4], M, params["gsc"], params["bsc"])
        resT = scT                                                   # bf16 (Cout, Mp)
    else:
        # identity shortcut: no 1x1 conv / BN inputs at all; residual is the
        # (bf16) strided input itself — precision trade-off consistent with the
        # bf16 intermediate strategy, well inside the test tolerance.
        y2T, st2 = _conv_stats_call(w2T, p2T, Cout, Mp, tm, budget)
        scale2, shift2 = _bn_scale_shift(st2, M, params["g2"], params["b2"])
        scale_sc = jnp.ones((Cout,), jnp.float32)
        shift_sc = jnp.zeros((Cout,), jnp.float32)
        resT = xsT                                                   # Cin == Cout

    coeff = jnp.stack([scale2, shift2, scale_sc, shift_sc], axis=1)  # (Cout, 4) f32

    # ---- phase 2: BN2 + BN_sc + residual add + ReLU (lane-dense output) ------
    outT = _finalize_call(coeff, y2T, resT, Cout, Mp, tm, budget)    # (Cout, Mp) f32

    out = outT[:, :M].reshape(Cout, N, Ho, Wo)
    return jnp.transpose(out, (1, 0, 2, 3))                          # NCHW


# --------------------------------------------------------------------------- #
# Parameter init (matches init_layer) and pure-JAX reference
# --------------------------------------------------------------------------- #
def init_params(key, Cin, Cout):
    k1, k2, k3 = jax.random.split(key, 3)
    n3 = 3 * 3 * Cout
    n1 = 1 * 1 * Cout
    ones = jnp.ones((Cout,), jnp.float32)
    zeros = jnp.zeros((Cout,), jnp.float32)
    return dict(
        w1=jax.random.normal(k1, (Cout, Cin, 3, 3), jnp.float32) * math.sqrt(2.0 / n3),
        w2=jax.random.normal(k2, (Cout, Cout, 3, 3), jnp.float32) * math.sqrt(2.0 / n3),
        wsc=jax.random.normal(k3, (Cout, Cin, 1, 1), jnp.float32) * math.sqrt(2.0 / n1),
        g1=ones, b1=zeros, g2=ones, b2=zeros, gsc=ones, bsc=zeros,
    )


def ref_forward(x_nchw, params, half_res):
    # Pure-JAX f32 reference of SimpleBlock.forward (training-mode BN, biased var).
    x = jnp.transpose(x_nchw, (0, 2, 3, 1))
    stride = 2 if half_res else 1

    def conv(h, w_oihw, s):
        w = jnp.transpose(w_oihw, (2, 3, 1, 0))
        p = w.shape[0] // 2
        return lax.conv_general_dilated(h, w, (s, s), [(p, p), (p, p)],
                                        dimension_numbers=("NHWC", "HWIO", "NHWC"))

    def bn(h, g, b):
        m = h.mean(axis=(0, 1, 2))
        v = h.var(axis=(0, 1, 2))
        return (h - m) / jnp.sqrt(v + EPS) * g + b

    h = jax.nn.relu(bn(conv(x, params["w1"], stride), params["g1"], params["b1"]))
    h = bn(conv(h, params["w2"], 1), params["g2"], params["b2"])
    if x.shape[-1] != params["w1"].shape[0]:
        sc = bn(conv(x, params["wsc"], stride), params["gsc"], params["bsc"])
    else:
        sc = x[:, ::stride, ::stride, :]
    out = jax.nn.relu(h + sc)
    return jnp.transpose(out, (0, 3, 1, 2))


if __name__ == "__main__":
    key = jax.random.PRNGKey(0)

    # (Cin, Cout, half_res): 1x1-shortcut/stride1, identity shortcut, 1x1/stride2
    configs = [(8, 16, False), (16, 16, False), (8, 16, True)]
    N, H, W = 2, 16, 16

    for idx, (Cin, Cout, half_res) in enumerate(configs):
        kx, kp = jax.random.split(jax.random.fold_in(key, idx))
        x = jax.random.normal(kx, (N, Cin, H, W), jnp.float32)
        params = init_params(kp, Cin, Cout)

        out = jax.block_until_ready(simple_block_forward(x, params, half_res))
        ref = jax.block_until_ready(ref_forward(x, params, half_res))

        assert out.shape == ref.shape, (out.shape, ref.shape)
        # bf16 MXU operands + bf16 intermediates (y1/y2/sc/residual) -> compare
        # at a bf16-appropriate tolerance.
        assert jnp.allclose(out, ref, rtol=5e-2, atol=5e-2), \
            float(jnp.max(jnp.abs(out - ref)))

    # TODO(synk): BatchNorm running_mean/running_var momentum buffer updates are
    # training-time side effects only; they do not affect the forward output.
    print("KERNEL_OK")
</pallas_src>

<mosaic_0001>
module attributes {stable_mosaic.version = 11 : i64} {
  func.func @_conv_stats_kernel(%arg0: i32, %arg1: memref<16x72xbf16, #tpu.memory_space<vmem>>, %arg2: memref<72x256xbf16, #tpu.memory_space<vmem>>, %arg3: memref<16x256xbf16, #tpu.memory_space<vmem>>, %arg4: memref<1x16x2xf32, #tpu.memory_space<vmem>>) attributes {dimension_semantics = [#tpu.dimension_semantics<parallel>], iteration_bounds = array<i64: 2>, scalar_prefetch = 0 : i64, scratch_operands = 0 : i64, tpu.core_type = #tpu.core_type<tc>, window_params = [{pipeline_mode = #tpu.pipeline_mode<synchronous>, transform_indices = @transform_0, window_bounds = array<i64: 16, 72>}, {transform_indices = @transform_1, window_bounds = array<i64: 72, 256>}, {transform_indices = @transform_2, window_bounds = array<i64: 16, 256>}, {transform_indices = @transform_3, window_bounds = array<i64: 1, 16, 2>}]} {
    %c0 = arith.constant 0 : index
    %c0_0 = arith.constant 0 : index
    %0 = vector.load %arg1[%c0, %c0_0] : memref<16x72xbf16, #tpu.memory_space<vmem>>, vector<16x72xbf16>
    %c0_1 = arith.constant 0 : index
    %c0_2 = arith.constant 0 : index
    %1 = vector.load %arg2[%c0_1, %c0_2] : memref<72x256xbf16, #tpu.memory_space<vmem>>, vector<72x256xbf16>
    %cst = arith.constant dense<0.000000e+00> : vector<16x256xf32>
    %2 = tpu.matmul %0, %1, %cst {dimension_numbers = #tpu.dot_dimension_numbers<[1], [0], [0], [1], [0, 0, 1, 1], [], []>} : vector<16x72xbf16>, vector<72x256xbf16>, vector<16x256xf32> -> vector<16x256xf32>
    %3 = arith.truncf %2 : vector<16x256xf32> to vector<16x256xbf16>
    %c0_3 = arith.constant 0 : index
    %c0_4 = arith.constant 0 : index
    %4 = vector.load %arg3[%c0_3, %c0_4] : memref<16x256xbf16, #tpu.memory_space<vmem>>, vector<16x256xbf16>
    tpu.vector_store %arg3[%c0_3, %c0_4], %3 {strides = array<i32>} : memref<16x256xbf16, #tpu.memory_space<vmem>>, vector<16x256xbf16>,
    %5 = tpu.iota {dimensions = array<i32: 1>} : vector<16x2xi32>
    %cst_5 = arith.constant 0.000000e+00 : f32
    %6 = vector.broadcast %cst_5 : f32 to vector<16x2xf32>
    %cst_6 = arith.constant dense<0.000000e+00> : vector<16xf32>
    %7 = vector.multi_reduction <add>, %2, %cst_6 [1] : vector<16x256xf32> to vector<16xf32>
    %8 = vector.shape_cast %7 : vector<16xf32> to vector<16x1xf32>
    %9 = arith.mulf %2, %2 : vector<16x256xf32>
    %cst_7 = arith.constant dense<0.000000e+00> : vector<16xf32>
    %10 = vector.multi_reduction <add>, %9, %cst_7 [1] : vector<16x256xf32> to vector<16xf32>
    %11 = vector.shape_cast %10 : vector<16xf32> to vector<16x1xf32>
    %c0_i32 = arith.constant 0 : i32
    %12 = vector.broadcast %c0_i32 : i32 to vector<16x2xi32>
    %13 = arith.cmpi eq, %5, %12 : vector<16x2xi32>
    %14 = vector.shape_cast %8 : vector<16x1xf32> to vector<16x1xf32>
    %15 = vector.broadcast %14 : vector<16x1xf32> to vector<16x2xf32>
    %16 = arith.select %13, %15, %6 : vector<16x2xi1>, vector<16x2xf32>
    %c1_i32 = arith.constant 1 : i32
    %17 = vector.broadcast %c1_i32 : i32 to vector<16x2xi32>
    %18 = arith.cmpi eq, %5, %17 : vector<16x2xi32>
    %19 = vector.shape_cast %11 : vector<16x1xf32> to vector<16x1xf32>
    %20 = vector.broadcast %19 : vector<16x1xf32> to vector<16x2xf32>
    %21 = arith.select %18, %20, %16 : vector<16x2xi1>, vector<16x2xf32>
    %22 = vector.shape_cast %21 : vector<16x2xf32> to vector<1x16x2xf32>
    %c0_8 = arith.constant 0 : index
    %c0_9 = arith.constant 0 : index
    %c0_10 = arith.constant 0 : index
    %23 = vector.load %arg4[%c0_8, %c0_9, %c0_10] : memref<1x16x2xf32, #tpu.memory_space<vmem>>, vector<1x16x2xf32>
    tpu.vector_store %arg4[%c0_8, %c0_9, %c0_10], %22 {strides = array<i32>} : memref<1x16x2xf32, #tpu.memory_space<vmem>>, vector<1x16x2xf32>,
    return
  }
  func.func @transform_0(%arg0: i32) -> (i32, i32) {
    %c0_i32 = arith.constant 0 : i32
    %c0_i32_0 = arith.constant 0 : i32
    %c0_i32_1 = arith.constant 0 : i32
    return %c0_i32, %c0_i32_0 : i32, i32
  }
  func.func @transform_1(%arg0: i32) -> (i32, i32) {
    %c0_i32 = arith.constant 0 : i32
    %c0_i32_0 = arith.constant 0 : i32
    return %c0_i32, %arg0 : i32, i32
  }
  func.func @transform_2(%arg0: i32) -> (i32, i32) {
    %c0_i32 = arith.constant 0 : i32
    %c0_i32_0 = arith.constant 0 : i32
    return %c0_i32, %arg0 : i32, i32
  }
  func.func @transform_3(%arg0: i32) -> (i32, i32, i32) {
    %c0_i32 = arith.constant 0 : i32
    %c0_i32_0 = arith.constant 0 : i32
    %c0_i32_1 = arith.constant 0 : i32
    return %arg0, %c0_i32, %c0_i32_0 : i32, i32, i32
  }
}

module attributes {stable_mosaic.version = 11 : i64} {
  func.func @_conv_stats_sc_kernel(%arg0: i32, %arg1: memref<16x144xbf16, #tpu.memory_space<vmem>>, %arg2: memref<16x8xbf16, #tpu.memory_space<vmem>>, %arg3: memref<144x256xbf16, #tpu.memory_space<vmem>>, %arg4: memref<8x256xbf16, #tpu.memory_space<vmem>>, %arg5: memref<16x256xbf16, #tpu.memory_space<vmem>>, %arg6: memref<16x256xbf16, #tpu.memory_space<vmem>>, %arg7: memref<1x16x4xf32, #tpu.memory_space<vmem>>) attributes {dimension_semantics = [#tpu.dimension_semantics<parallel>], iteration_bounds = array<i64: 2>, scalar_prefetch = 0 : i64, scratch_operands = 0 : i64, tpu.core_type = #tpu.core_type<tc>, window_params = [{pipeline_mode = #tpu.pipeline_mode<synchronous>, transform_indices = @transform_0, window_bounds = array<i64: 16, 144>}, {pipeline_mode = #tpu.pipeline_mode<synchronous>, transform_indices = @transform_1, window_bounds = array<i64: 16, 8>}, {transform_indices = @transform_2, window_bounds = array<i64: 144, 256>}, {transform_indices = @transform_3, window_bounds = array<i64: 8, 256>}, {transform_indices = @transform_4, window_bounds = array<i64: 16, 256>}, {transform_indices = @transform_5, window_bounds = array<i64: 16, 256>}, {transform_indices = @transform_6, window_bounds = array<i64: 1, 16, 4>}]} {
    %c0 = arith.constant 0 : index
    %c0_0 = arith.constant 0 : index
    %0 = vector.load %arg1[%c0, %c0_0] : memref<16x144xbf16, #tpu.memory_space<vmem>>, vector<16x144xbf16>
    %c0_1 = arith.constant 0 : index
    %c0_2 = arith.constant 0 : index
    %1 = vector.load %arg3[%c0_1, %c0_2] : memref<144x256xbf16, #tpu.memory_space<vmem>>, vector<144x256xbf16>
    %cst = arith.constant dense<0.000000e+00> : vector<16x256xf32>
    %2 = tpu.matmul %0, %1, %cst {dimension_numbers = #tpu.dot_dimension_numbers<[1], [0], [0], [1], [0, 0, 1, 1], [], []>} : vector<16x144xbf16>, vector<144x256xbf16>, vector<16x256xf32> -> vector<16x256xf32>
    %3 = arith.truncf %2 : vector<16x256xf32> to vector<16x256xbf16>
    %c0_3 = arith.constant 0 : index
    %c0_4 = arith.constant 0 : index
    %4 = vector.load %arg5[%c0_3, %c0_4] : memref<16x256xbf16, #tpu.memory_space<vmem>>, vector<16x256xbf16>
    tpu.vector_store %arg5[%c0_3, %c0_4], %3 {strides = array<i32>} : memref<16x256xbf16, #tpu.memory_space<vmem>>, vector<16x256xbf16>,
    %c0_5 = arith.constant 0 : index
    %c0_6 = arith.constant 0 : index
    %5 = vector.load %arg2[%c0_5, %c0_6] : memref<16x8xbf16, #tpu.memory_space<vmem>>, vector<16x8xbf16>
    %c0_7 = arith.constant 0 : index
    %c0_8 = arith.constant 0 : index
    %6 = vector.load %arg4[%c0_7, %c0_8] : memref<8x256xbf16, #tpu.memory_space<vmem>>, vector<8x256xbf16>
    %cst_9 = arith.constant dense<0.000000e+00> : vector<16x256xf32>
    %7 = tpu.matmul %5, %6, %cst_9 {dimension_numbers = #tpu.dot_dimension_numbers<[1], [0], [0], [1], [0, 0, 1, 1], [], []>} : vector<16x8xbf16>, vector<8x256xbf16>, vector<16x256xf32> -> vector<16x256xf32>
    %8 = arith.truncf %7 : vector<16x256xf32> to vector<16x256xbf16>
    %c0_10 = arith.constant 0 : index
    %c0_11 = arith.constant 0 : index
    %9 = vector.load %arg6[%c0_10, %c0_11] : memref<16x256xbf16, #tpu.memory_space<vmem>>, vector<16x256xbf16>
    tpu.vector_store %arg6[%c0_10, %c0_11], %8 {strides = array<i32>} : memref<16x256xbf16, #tpu.memory_space<vmem>>, vector<16x256xbf16>,
    %10 = tpu.iota {dimensions = array<i32: 1>} : vector<16x4xi32>
    %cst_12 = arith.constant 0.000000e+00 : f32
    %11 = vector.broadcast %cst_12 : f32 to vector<16x4xf32>
    %cst_13 = arith.constant dense<0.000000e+00> : vector<16xf32>
    %12 = vector.multi_reduction <add>, %2, %cst_13 [1] : vector<16x256xf32> to vector<16xf32>
    %13 = vector.shape_cast %12 : vector<16xf32> to vector<16x1xf32>
    %14 = arith.mulf %2, %2 : vector<16x256xf32>
    %cst_14 = arith.constant dense<0.000000e+00> : vector<16xf32>
    %15 = vector.multi_reduction <add>, %14, %cst_14 [1] : vector<16x256xf32> to vector<16xf32>
    %16 = vector.shape_cast %15 : vector<16xf32> to vector<16x1xf32>
    %c0_i32 = arith.constant 0 : i32
    %17 = vector.broadcast %c0_i32 : i32 to vector<16x4xi32>
    %18 = arith.cmpi eq, %10, %17 : vector<16x4xi32>
    %19 = vector.shape_cast %13 : vector<16x1xf32> to vector<16x1xf32>
    %20 = vector.broadcast %19 : vector<16x1xf32> to vector<16x4xf32>
    %21 = arith.select %18, %20, %11 : vector<16x4xi1>, vector<16x4xf32>
    %c1_i32 = arith.constant 1 : i32
    %22 = vector.broadcast %c1_i32 : i32 to vector<16x4xi32>
    %23 = arith.cmpi eq, %10, %22 : vector<16x4xi32>
    %24 = vector.shape_cast %16 : vector<16x1xf32> to vector<16x1xf32>
    %25 = vector.broadcast %24 : vector<16x1xf32> to vector<16x4xf32>
    %26 = arith.select %23, %25, %21 : vector<16x4xi1>, vector<16x4xf32>
    %cst_15 = arith.constant dense<0.000000e+00> : vector<16xf32>
    %27 = vector.multi_reduction <add>, %7, %cst_15 [1] : vector<16x256xf32> to vector<16xf32>
    %28 = vector.shape_cast %27 : vector<16xf32> to vector<16x1xf32>
    %29 = arith.mulf %7, %7 : vector<16x256xf32>
    %cst_16 = arith.constant dense<0.000000e+00> : vector<16xf32>
    %30 = vector.multi_reduction <add>, %29, %cst_16 [1] : vector<16x256xf32> to vector<16xf32>
    %31 = vector.shape_cast %30 : vector<16xf32> to vector<16x1xf32>
    %c2_i32 = arith.constant 2 : i32
    %32 = vector.broadcast %c2_i32 : i32 to vector<16x4xi32>
    %33 = arith.cmpi eq, %10, %32 : vector<16x4xi32>
    %34 = vector.shape_cast %28 : vector<16x1xf32> to vector<16x1xf32>
    %35 = vector.broadcast %34 : vector<16x1xf32> to vector<16x4xf32>
    %36 = arith.select %33, %35, %26 : vector<16x4xi1>, vector<16x4xf32>
    %c3_i32 = arith.constant 3 : i32
    %37 = vector.broadcast %c3_i32 : i32 to vector<16x4xi32>
    %38 = arith.cmpi eq, %10, %37 : vector<16x4xi32>
    %39 = vector.shape_cast %31 : vector<16x1xf32> to vector<16x1xf32>
    %40 = vector.broadcast %39 : vector<16x1xf32> to vector<16x4xf32>
    %41 = arith.select %38, %40, %36 : vector<16x4xi1>, vector<16x4xf32>
    %42 = vector.shape_cast %41 : vector<16x4xf32> to vector<1x16x4xf32>
    %c0_17 = arith.constant 0 : index
    %c0_18 = arith.constant 0 : index
    %c0_19 = arith.constant 0 : index
    %43 = vector.load %arg7[%c0_17, %c0_18, %c0_19] : memref<1x16x4xf32, #tpu.memory_space<vmem>>, vector<1x16x4xf32>
    tpu.vector_store %arg7[%c0_17, %c0_18, %c0_19], %42 {strides = array<i32>} : memref<1x16x4xf32, #tpu.memory_space<vmem>>, vector<1x16x4xf32>,
    return
  }
  func.func @transform_0(%arg0: i32) -> (i32, i32) {
    %c0_i32 = arith.constant 0 : i32
    %c0_i32_0 = arith.constant 0 : i32
    %c0_i32_1 = arith.constant 0 : i32
    return %c0_i32, %c0_i32_0 : i32, i32
  }
  func.func @transform_1(%arg0: i32) -> (i32, i32) {
    %c0_i32 = arith.constant 0 : i32
    %c0_i32_0 = arith.constant 0 : i32
    %c0_i32_1 = arith.constant 0 : i32
    return %c0_i32, %c0_i32_0 : i32, i32
  }
  func.func @transform_2(%arg0: i32) -> (i32, i32) {
    %c0_i32 = arith.constant 0 : i32
    %c0_i32_0 = arith.constant 0 : i32
    return %c0_i32, %arg0 : i32, i32
  }
  func.func @transform_3(%arg0: i32) -> (i32, i32) {
    %c0_i32 = arith.constant 0 : i32
    %c0_i32_0 = arith.constant 0 : i32
    return %c0_i32, %arg0 : i32, i32
  }
  func.func @transform_4(%arg0: i32) -> (i32, i32) {
    %c0_i32 = arith.constant 0 : i32
    %c0_i32_0 = arith.constant 0 : i32
    return %c0_i32, %arg0 : i32, i32
  }
  func.func @transform_5(%arg0: i32) -> (i32, i32) {
    %c0_i32 = arith.constant 0 : i32
    %c0_i32_0 = arith.constant 0 : i32
    return %c0_i32, %arg0 : i32, i32
  }
  func.func @transform_6(%arg0: i32) -> (i32, i32, i32) {
    %c0_i32 = arith.constant 0 : i32
    %c0_i32_0 = arith.constant 0 : i32
    %c0_i32_1 = arith.constant 0 : i32
    return %arg0, %c0_i32, %c0_i32_0 : i32, i32, i32
  }
}

module attributes {stable_mosaic.version = 11 : i64} {
  func.func @_finalize_kernel(%arg0: i32, %arg1: memref<16x4xf32, #tpu.memory_space<vmem>>, %arg2: memref<16x256xbf16, #tpu.memory_space<vmem>>, %arg3: memref<16x256xbf16, #tpu.memory_space<vmem>>, %arg4: memref<16x256xf32, #tpu.memory_space<vmem>>) attributes {dimension_semantics = [#tpu.dimension_semantics<parallel>], iteration_bounds = array<i64: 2>, scalar_prefetch = 0 : i64, scratch_operands = 0 : i64, tpu.core_type = #tpu.core_type<tc>, window_params = [{pipeline_mode = #tpu.pipeline_mode<synchronous>, transform_indices = @transform_0, window_bounds = array<i64: 16, 4>}, {transform_indices = @transform_1, window_bounds = array<i64: 16, 256>}, {transform_indices = @transform_2, window_bounds = array<i64: 16, 256>}, {transform_indices = @transform_3, window_bounds = array<i64: 16, 256>}]} {
    %c0 = arith.constant 0 : index
    %c0_0 = arith.constant 0 : index
    %0 = vector.load %arg1[%c0, %c0_0] : memref<16x4xf32, #tpu.memory_space<vmem>>, vector<16x4xf32>
    %c0_1 = arith.constant 0 : index
    %c0_2 = arith.constant 0 : index
    %1 = vector.load %arg2[%c0_1, %c0_2] : memref<16x256xbf16, #tpu.memory_space<vmem>>, vector<16x256xbf16>
    %2 = arith.extf %1 : vector<16x256xbf16> to vector<16x256xf32>
    %c0_3 = arith.constant 0 : index
    %c0_4 = arith.constant 0 : index
    %3 = vector.load %arg3[%c0_3, %c0_4] : memref<16x256xbf16, #tpu.memory_space<vmem>>, vector<16x256xbf16>
    %4 = arith.extf %3 : vector<16x256xbf16> to vector<16x256xf32>
    %5 = vector.extract_strided_slice %0 {offsets = [0, 0], sizes = [16, 1], strides = [1, 1]} : vector<16x4xf32> to vector<16x1xf32>
    %6 = vector.broadcast %5 : vector<16x1xf32> to vector<16x256xf32>
    %7 = arith.mulf %2, %6 : vector<16x256xf32>
    %8 = vector.extract_strided_slice %0 {offsets = [0, 1], sizes = [16, 1], strides = [1, 1]} : vector<16x4xf32> to vector<16x1xf32>
    %9 = vector.broadcast %8 : vector<16x1xf32> to vector<16x256xf32>
    %10 = arith.addf %7, %9 : vector<16x256xf32>
    %11 = vector.extract_strided_slice %0 {offsets = [0, 2], sizes = [16, 1], strides = [1, 1]} : vector<16x4xf32> to vector<16x1xf32>
    %12 = vector.broadcast %11 : vector<16x1xf32> to vector<16x256xf32>
    %13 = arith.mulf %4, %12 : vector<16x256xf32>
    %14 = vector.extract_strided_slice %0 {offsets = [0, 3], sizes = [16, 1], strides = [1, 1]} : vector<16x4xf32> to vector<16x1xf32>
    %15 = vector.broadcast %14 : vector<16x1xf32> to vector<16x256xf32>
    %16 = arith.addf %13, %15 : vector<16x256xf32>
    %17 = arith.addf %10, %16 : vector<16x256xf32>
    %cst = arith.constant 0.000000e+00 : f32
    %18 = vector.broadcast %cst : f32 to vector<16x256xf32>
    %19 = arith.maximumf %17, %18 : vector<16x256xf32>
    %c0_5 = arith.constant 0 : index
    %c0_6 = arith.constant 0 : index
    %20 = vector.load %arg4[%c0_5, %c0_6] : memref<16x256xf32, #tpu.memory_space<vmem>>, vector<16x256xf32>
    tpu.vector_store %arg4[%c0_5, %c0_6], %19 {strides = array<i32>} : memref<16x256xf32, #tpu.memory_space<vmem>>, vector<16x256xf32>,
    return
  }
  func.func @transform_0(%arg0: i32) -> (i32, i32) {
    %c0_i32 = arith.constant 0 : i32
    %c0_i32_0 = arith.constant 0 : i32
    %c0_i32_1 = arith.constant 0 : i32
    return %c0_i32, %c0_i32_0 : i32, i32
  }
  func.func @transform_1(%arg0: i32) -> (i32, i32) {
    %c0_i32 = arith.constant 0 : i32
    %c0_i32_0 = arith.constant 0 : i32
    return %c0_i32, %arg0 : i32, i32
  }
  func.func @transform_2(%arg0: i32) -> (i32, i32) {
    %c0_i32 = arith.constant 0 : i32
    %c0_i32_0 = arith.constant 0 : i32
    return %c0_i32, %arg0 : i32, i32
  }
  func.func @transform_3(%arg0: i32) -> (i32, i32) {
    %c0_i32 = arith.constant 0 : i32
    %c0_i32_0 = arith.constant 0 : i32
    return %c0_i32, %arg0 : i32, i32
  }
}

</mosaic_0001>

<bundles_post_ra>
// kernel: simple_block_forward.3
= control target key start
LH: loop header
LB: loop body
LE: loop exit
PB: predicated region body
PF: predicated region fallthrough
CT: control target
= control target key end

     0   :  { %s661_s12 = smov 0   ;;  %s663_s13 = smov 0   ;;  %s739_s0 = inlined_call_operand.vmem [shape: bf16[16,72], index: 0, kind: input, shape index: {}]   ;;  %s740_s1 = inlined_call_operand.vmem [shape: bf16[72,512], index: 1, kind: input, shape index: {}]   ;;  %s741_s2 = inlined_call_operand.vmem [shape: bf16[16,512], index: 2, kind: output, shape index: {0}]   ;;  %s742_s3 = inlined_call_operand.vmem [shape: f32[2,16,2], index: 3, kind: output, shape index: {1}]  }
   0x1   :  { %s665_s14 = smov 0  }
   0x2 LB: > { %s677_s15 = sadd.s32 4294967295, %s638_s14   ;;  %s680_s16 = sadd.s32 1, %s638_s14   ;;  %s638_s14 = sphi %s665_s14, %s746_s14   ;;  %s634_s13 = sphi %s663_s13, %s745_s13   ;;  %s630_s12 = sphi %s661_s12, %s744_s12  }
   0x3   : > { %s39_s17 = ssub.s32 %s638_s14, %s680_s16  ;;  %s42_s18 = sadd.s32 1, %s634_s13 }
   0x4   : > { %p40_p0 = scmp.eq.s32.totalorder %s39_s17, 0  ;;  %p49_p1 = scmp.ne.s32.totalorder %s634_s13, %s630_s12 }
   0x5   : > { %p50_p2 = scmp.eq.s32.totalorder %s638_s14, 0  ;;  %p79_p3 = scmp.eq.s32.totalorder %s677_s15, 1 }
   0x6   : > { %s690_s19 = scalar_select %p40_p0, %s634_s13, %s42_s18  }
   0x7   : > { %p51_p4 = por %p50_p2, %p49_p1  ;;  %p692_p5 = por %p79_p3, %p49_p1 }
   0x8   : > { %p542_p6 = scmp.ge.s32.totalorder %s638_s14, 2 }
   0xa   : > { %130 = sbr.rel (%p542_p6) target bundleno = 26 (0x1a), region = 20 }
  0x11   : > { %133 = sbr.rel (!%p51_p4) target bundleno = 26 (0x1a), region = 24  ;;  %s135_s21 = sand.u32 (%p51_p4), 1, %s634_s13  }
  0x12   : > { %s569_s22 = sshll.u32 (%p51_p4), %s638_s14, 3  ;;  %s574_s23 = smul.u32 (%p51_p4), 72, %s135_s21 }
  0x13   : > { %s140_s26 = scalar_lea.vmem (%p51_p4), %s740_s1, %s569_s22 }
  0x14   : > { %v184_v0 = vld [vmem:[%s140_s26] sm:$0xff] (%p51_p4)  ;;  %v186_v1 = vld [vmem:[%s140_s26 + $0x10] sm:$0xff] (%p51_p4)  ;;  %s137_s27 = scalar_lea.vmem (%p51_p4), [#allocation2], %s574_s23 }
  0x15   : > { %v188_v2 = vld [vmem:[%s140_s26 + $0x20] sm:$0xff] (%p51_p4)  ;;  %v190_v3 = vld [vmem:[%s140_s26 + $0x30] sm:$0xff] (%p51_p4)  ;;  %185 = vst [vmem:[%s137_s27] sm:$0xff] (%p51_p4), %v184_v0  ;;  %187 = vst [vmem:[%s137_s27 + $0x8] sm:$0xff] (%p51_p4), %v186_v1 }
  0x16   : > { %v192_v4 = vld [vmem:[%s140_s26 + $0x40] sm:$0xff] (%p51_p4)  ;;  %v194_v5 = vld [vmem:[%s140_s26 + $0x50] sm:$0xff] (%p51_p4)  ;;  %189 = vst [vmem:[%s137_s27 + $0x10] sm:$0xff] (%p51_p4), %v188_v2  ;;  %191 = vst [vmem:[%s137_s27 + $0x18] sm:$0xff] (%p51_p4), %v190_v3 }
  0x17   : > { %193 = vst [vmem:[%s137_s27 + $0x20] sm:$0xff] (%p51_p4), %v192_v4  ;;  %195 = vst [vmem:[%s137_s27 + $0x28] sm:$0xff] (%p51_p4), %v194_v5  ;;  %v196_v6 = vld [vmem:[%s140_s26 + $0x60] sm:$0xff] (%p51_p4)  ;;  %v198_v7 = vld [vmem:[%s140_s26 + $0x70] sm:$0xff] (%p51_p4) }
  0x18   : > { %v200_v8 = vld [vmem:[%s140_s26 + $0x80] sm:$0xff]  ;;  %197 = vst [vmem:[%s137_s27 + $0x30] sm:$0xff] %v196_v6  ;;  %199 = vst [vmem:[%s137_s27 + $0x38] sm:$0xff] %v198_v7 }
  0x19   : > { %201 = vst [vmem:[%s137_s27 + $0x40] sm:$0xff] %v200_v8 }
  0x1a PF: > { %p545_p7 = scmp.ge.s32.totalorder %s638_s14, 1  ;;  %p206_p8 = scmp.lt.s32.totalorder %s638_s14, 3 }
  0x1c   : > { %p207_p9 = pnand %p545_p7, %p206_p8 }
  0x1d   : > { %s213_s28 = sand.u32 (!%p207_p9), 1, %s630_s12   ;;  %v640_v9 = vmov (!%p207_p9), 0   ;;  %vm313_vm0 = vcmask (!%p207_p9), 1043456   ;;  %v615_v22 = vld [vmem:[%s739_s0] sm:$0xff] (!%p207_p9)   ;;  %vm309_vm1 = vcmask (!%p207_p9), 588800   ;;  %v377_v37 = vlaneseq (!%p207_p9)  ;;  %p242_p10 = scmp.lt.s32.totalorder (!%p207_p9), %s677_s15, 1 }
  0x1e   : > { %210 = sbr.rel (%p207_p9) target bundleno = 420 (0x1a4), region = 62  ;;  %352 = vmatprep.mubr.bf16.mxu0 (!%p207_p9), %v640_v9  ;;  %s546_s6 = sshll.u32 (!%p207_p9), %s213_s28, 4  ;;  %vm401_vm4 = vcmask (!%p207_p9), 15360  }
  0x1f   : > { %s575_s29 = smul.u32 (!%p207_p9), 72, %s213_s28  ;;  %s712_s7 = scalar_lea.vmem (!%p207_p9), [#allocation3], %s546_s6  ;;  %v378_v38 = vand.u32 (!%p207_p9), 127, %v377_v37 }
  0x21   : > { %s215_s30 = scalar_lea.vmem (!%p207_p9), [#allocation2], %s575_s29  ;;  %vm395_vm2 = vcmp.eq.s32.totalorder (!%p207_p9), %v378_v38, 0  ;;  %vm398_vm3 = vcmp.eq.s32.totalorder (!%p207_p9), %v378_v38, 1 }
  0x22   : > { %v601_v10 = vld [vmem:[%s215_s30 + $0x4] ss:$8 sps:$4 sm:$0xff] (!%p207_p9)   ;;  %v603_v11 = vld [vmem:[%s215_s30] ss:$8 sps:$4 sm:$0xff] (!%p207_p9)   ;;  %v604_v12 = vld [vmem:[%s215_s30 + $0x14] ss:$8 sps:$4 sm:$0xff] (!%p207_p9)  }
  0x23   : > { %320 = vmatprep.subr.bf16.mxu0 (!%p207_p9), %v601_v10  ;;  %v606_v13 = vld [vmem:[%s215_s30 + $0x10] ss:$8 sps:$4 sm:$0xff] (!%p207_p9)   ;;  %v607_v14 = vld [vmem:[%s215_s30 + $0x24] ss:$8 sps:$4 sm:$0xff] (!%p207_p9)   ;;  %v609_v15 = vld [vmem:[%s215_s30 + $0x20] ss:$8 sps:$4 sm:$0xff] (!%p207_p9)  }
  0x24   : > { %321 = vmatpush1.bf16.msra.mxu0 (!%p207_p9), %v603_v11  ;;  %v610_v16 = vld [vmem:[%s215_s30 + $0x34] ss:$8 sps:$4 sm:$0xff] (!%p207_p9)   ;;  %v258_v17 = vld [vmem:[%s215_s30 + $0x40] sm:$0xff] (!%p207_p9)  ;;  %v612_v18 = vld [vmem:[%s215_s30 + $0x30] ss:$8 sps:$4 sm:$0xff] (!%p207_p9)  }
  0x25   : > { %322 = vmatprep.subr.bf16.mxu0 %v604_v12  ;;  %v559_v19 = vcombine.high %v258_v17, %v258_v17  ;;  %v558_v20 = vcombine.low %v258_v17, %v258_v17  ;;  %s243_s8 = scalar_select %p242_p10, %s677_s15, 1 }
  0x26   : > { %s573_s14 = sshll.u32 (%p692_p5), %s677_s15, 3 }
  0x27   : > { %v315_v21 = vsel %vm313_vm0, %v558_v20, 0  ;;  %s570_s9 = sshll.u32 %s243_s8, 4  ;;  %s418_s21 = scalar_lea.vmem (%p692_p5), %s741_s2, %s573_s14 }
  0x28   : > { %323 = vmatpush1.bf16.msra.mxu0 %v606_v13  ;;  %s246_s12 = scalar_lea.vmem %s742_s3, %s570_s9 }
  0x29   : > { %324 = vmatprep.subr.bf16.mxu0 %v607_v14 }
  0x2c   : > { %325 = vmatpush1.bf16.msra.mxu0 %v609_v15 }
  0x2d   : > { %326 = vmatprep.subr.bf16.mxu0 %v610_v16 }
  0x30   : > { %327 = vmatpush1.bf16.msra.mxu0 %v612_v18 }
  0x31   : > { %560 = vmatprep.subr.msk.bf16.mxu0 %vm313_vm0, %v559_v19 }
  0x34   : > { %329 = vmatpush1.bf16.msra.mxu0 %v315_v21 }
  0x37   : > { %561 = vmatmul.mubr.msk.bf16.vlgmr.msra.gmra.mrb[0].mxu0 %vm309_vm1, %v615_v22 }
 0x10a   : > { %v354_v23 = vpop.f32.mrb[0].mxu0 }
 0x10b   : > { %v356_v24 = vpop.f32.mrb[1].mxu0  ;;  %v385_v25 = vmul.f32 %v354_v23, %v354_v23 }
 0x10c   : > { %v571_v26 = vpack.c.bf16 %v356_v24, %v354_v23  ;;  %v358_v27 = vpop.f32.mrb[2].mxu0  ;;  %v379_v28 = vadd.f32 %v356_v24, %v354_v23  ;;  %v386_v29 = vmul.f32 %v356_v24, %v356_v24 }
 0x10d   : > { %v360_v30 = vpop.f32.mrb[3].mxu0  ;;  %v387_v31 = vmul.f32 %v358_v27, %v358_v27 }
 0x10e   : > { %v572_v32 = vpack.c.bf16 %v360_v30, %v358_v27  ;;  %375 = vst [vmem:[%s712_s7] sm:$0xff] %v571_v26  ;;  %v388_v33 = vmul.f32 %v360_v30, %v360_v30  ;;  %380 = vadd.xlane.f32.xlu0 %v379_v28  ;;  %v389_v34 = vadd.f32 %v386_v29, %v385_v25 }
 0x10f   : > { %v382_v35 = vadd.f32 %v360_v30, %v358_v27 }
 0x110   : > { %376 = vst [vmem:[%s712_s7 + $0x8] sm:$0xff] %v572_v32  ;;  %390 = vadd.xlane.f32.xlu1 %v389_v34  ;;  %v392_v36 = vadd.f32 %v388_v33, %v387_v31 }
 0x112   : > { %383 = vadd.xlane.f32.xlu0 %v382_v35 }
 0x114   : > { %393 = vadd.xlane.f32.xlu1 %v392_v36 }
 0x115   : > { %v448_v47 = vld [vmem:[%s712_s7] sm:$0xff] (%p692_p5) }
 0x116   : > { %449 = vst [vmem:[%s418_s21] sm:$0xff] (%p692_p5), %v448_v47 }
 0x117   : > { %v450_v48 = vld [vmem:[%s712_s7 + $0x8] sm:$0xff] (%p692_p5) }
 0x118   : > { %451 = vst [vmem:[%s418_s21 + $0x10] sm:$0xff] (%p692_p5), %v450_v48 }
 0x19b   : > { %v381_v39 = vpop.xlane.xlu0 %380 }
 0x19c   : > { %v396_v40 = vsel %vm395_vm2, %v381_v39, 0.0 }
 0x19d   : > { %v391_v41 = vpop.xlane.xlu1 %390  ;;  %415 = sbr.rel (!%p692_p5) target bundleno = 420 (0x1a4), region = 70 }
 0x19e   : > { %v399_v42 = vsel %vm398_vm3, %v391_v41, %v396_v40 }
 0x19f   : > { %402 = vst.msk [vmem:[%s246_s12] sm:$0xff] %vm401_vm4, %v399_v42  ;;  %v384_v43 = vpop.xlane.xlu0 %383 }
 0x1a0   : > { %v397_v44 = vsel %vm395_vm2, %v384_v43, 0.0 }
 0x1a1   : > { %v394_v45 = vpop.xlane.xlu1 %393 }
 0x1a2   : > { %v400_v46 = vsel %vm398_vm3, %v394_v45, %v397_v44 }
 0x1a3   : > { %403 = vst.msk [vmem:[%s246_s12 + $0x8] sm:$0xff] %vm401_vm4, %v400_v46 }
 0x1a4 PF: > { %p11_p11 = scmp.ge.s32.totalorder %s680_s16, 4   ;;  %s744_s12 = smov %s634_s13 }
 0x1a5   : > { %s745_s13 = smov %s690_s19  ;;  %s746_s14 = smov %s680_s16 }
 0x1a6   :  { %13 = sbr.rel (!%p11_p11) target bundleno = 2 (0x2), region = 151 }

// kernel: simple_block_forward.4
= control target key start
LH: loop header
LB: loop body
LE: loop exit
PB: predicated region body
PF: predicated region fallthrough
CT: control target
= control target key end

     0   :  { %s1104_s21 = smov 0   ;;  %s1106_s22 = smov 0   ;;  %s1244_s0 = inlined_call_operand.vmem [shape: bf16[16,144], index: 0, kind: input, shape index: {}]   ;;  %s1245_s1 = inlined_call_operand.vmem [shape: bf16[16,8], index: 1, kind: input, shape index: {}]   ;;  %s1246_s2 = inlined_call_operand.vmem [shape: bf16[144,512], index: 2, kind: input, shape index: {}]   ;;  %s1247_s3 = inlined_call_operand.vmem [shape: bf16[8,512], index: 3, kind: input, shape index: {}]   ;;  %s1248_s4 = inlined_call_operand.vmem [shape: bf16[16,512], index: 4, kind: output, shape index: {0}]   ;;  %s1249_s5 = inlined_call_operand.vmem [shape: bf16[16,512], index: 5, kind: output, shape index: {1}]   ;;  %s1250_s6 = inlined_call_operand.vmem [shape: f32[2,16,4], index: 6, kind: output, shape index: {2}]  }
   0x1   :  { %s1108_s23 = smov 0  }
   0x2 LB: > { %s1120_s24 = sadd.s32 4294967295, %s1066_s23   ;;  %s1123_s25 = sadd.s32 1, %s1066_s23   ;;  %s1066_s23 = sphi %s1108_s23, %s1254_s23   ;;  %s1062_s22 = sphi %s1106_s22, %s1253_s22   ;;  %s1058_s21 = sphi %s1104_s21, %s1252_s21  }
   0x3   : > { %s63_s26 = ssub.s32 %s1066_s23, %s1123_s25  ;;  %s66_s27 = sadd.s32 1, %s1062_s22 }
   0x4   : > { %p64_p0 = scmp.eq.s32.totalorder %s63_s26, 0  ;;  %p73_p1 = scmp.ne.s32.totalorder %s1062_s22, %s1058_s21 }
   0x5   : > { %p74_p2 = scmp.eq.s32.totalorder %s1066_s23, 0  ;;  %p129_p3 = scmp.eq.s32.totalorder %s1120_s24, 1 }
   0x6   : > { %s1133_s28 = scalar_select %p64_p0, %s1062_s22, %s66_s27  }
   0x7   : > { %p75_p4 = por %p74_p2, %p73_p1  ;;  %p1135_p5 = por %p129_p3, %p73_p1 }
   0x8   : > { %p928_p6 = scmp.ge.s32.totalorder %s1066_s23, 2 }
   0xa   : > { %209 = sbr.rel (%p928_p6) target bundleno = 30 (0x1e), region = 24 }
  0x11   : > { %212 = sbr.rel (!%p75_p4) target bundleno = 30 (0x1e), region = 28  ;;  %s214_s30 = sand.u32 (%p75_p4), 1, %s1062_s22  }
  0x12   : > { %s976_s7 = sshll.u32 (%p75_p4), %s1066_s23, 3  ;;  %s984_s8 = smul.u32 (%p75_p4), 144, %s214_s30 }
  0x13   : > { %s1145_s11 = scalar_lea.vmem (%p75_p4), %s1246_s2, %s976_s7 }
  0x14   : > { %v281_v0 = vld [vmem:[%s1145_s11] sm:$0xff] (%p75_p4)  ;;  %v283_v1 = vld [vmem:[%s1145_s11 + $0x10] sm:$0xff] (%p75_p4)  ;;  %s216_s12 = scalar_lea.vmem (%p75_p4), [#allocation2], %s984_s8 }
  0x15   : > { %v285_v2 = vld [vmem:[%s1145_s11 + $0x20] sm:$0xff] (%p75_p4)  ;;  %v287_v3 = vld [vmem:[%s1145_s11 + $0x30] sm:$0xff] (%p75_p4)  ;;  %282 = vst [vmem:[%s216_s12] sm:$0xff] (%p75_p4), %v281_v0  ;;  %284 = vst [vmem:[%s216_s12 + $0x8] sm:$0xff] (%p75_p4), %v283_v1 }
  0x16   : > { %v289_v4 = vld [vmem:[%s1145_s11 + $0x40] sm:$0xff] (%p75_p4)  ;;  %v291_v5 = vld [vmem:[%s1145_s11 + $0x50] sm:$0xff] (%p75_p4)  ;;  %286 = vst [vmem:[%s216_s12 + $0x10] sm:$0xff] (%p75_p4), %v285_v2  ;;  %288 = vst [vmem:[%s216_s12 + $0x18] sm:$0xff] (%p75_p4), %v287_v3 }
  0x17   : > { %290 = vst [vmem:[%s216_s12 + $0x20] sm:$0xff] (%p75_p4), %v289_v4  ;;  %292 = vst [vmem:[%s216_s12 + $0x28] sm:$0xff] (%p75_p4), %v291_v5  ;;  %v293_v6 = vld [vmem:[%s1145_s11 + $0x60] sm:$0xff] (%p75_p4)  ;;  %v295_v7 = vld [vmem:[%s1145_s11 + $0x70] sm:$0xff] (%p75_p4) }
  0x18   : > { %v297_v8 = vld [vmem:[%s1145_s11 + $0x80] sm:$0xff]  ;;  %294 = vst [vmem:[%s216_s12 + $0x30] sm:$0xff] %v293_v6  ;;  %296 = vst [vmem:[%s216_s12 + $0x38] sm:$0xff] %v295_v7  ;;  %v299_v9 = vld [vmem:[%s1145_s11 + $0x90] sm:$0xff] }
  0x19   : > { %298 = vst [vmem:[%s216_s12 + $0x40] sm:$0xff] %v297_v8  ;;  %v301_v10 = vld [vmem:[%s1145_s11 + $0xa0] sm:$0xff]  ;;  %v303_v11 = vld [vmem:[%s1145_s11 + $0xb0] sm:$0xff]  ;;  %300 = vst [vmem:[%s216_s12 + $0x48] sm:$0xff] %v299_v9 }
  0x1a   : > { %302 = vst [vmem:[%s216_s12 + $0x50] sm:$0xff] %v301_v10  ;;  %304 = vst [vmem:[%s216_s12 + $0x58] sm:$0xff] %v303_v11  ;;  %v305_v12 = vld [vmem:[%s1145_s11 + $0xc0] sm:$0xff]  ;;  %v307_v13 = vld [vmem:[%s1145_s11 + $0xd0] sm:$0xff] }
  0x1b   : > { %v309_v14 = vld [vmem:[%s1145_s11 + $0xe0] sm:$0xff]  ;;  %306 = vst [vmem:[%s216_s12 + $0x60] sm:$0xff] %v305_v12  ;;  %308 = vst [vmem:[%s216_s12 + $0x68] sm:$0xff] %v307_v13  ;;  %v311_v15 = vld [vmem:[%s1145_s11 + $0xf0] sm:$0xff] }
  0x1c   : > { %310 = vst [vmem:[%s216_s12 + $0x70] sm:$0xff] %v309_v14  ;;  %v313_v16 = vld [vmem:[%s1145_s11 + $0x100] sm:$0xff]  ;;  %v315_v17 = vld [vmem:[%s1145_s11 + $0x110] sm:$0xff]  ;;  %312 = vst [vmem:[%s216_s12 + $0x78] sm:$0xff] %v311_v15 }
  0x1d   : > { %314 = vst [vmem:[%s216_s12 + $0x80] sm:$0xff] %v313_v16  ;;  %316 = vst [vmem:[%s216_s12 + $0x88] sm:$0xff] %v315_v17 }
  0x1e PF: > { %p931_p7 = scmp.ge.s32.totalorder %s1066_s23, 1  ;;  %p330_p8 = scmp.lt.s32.totalorder %s1066_s23, 3 }
  0x20   : > { %p331_p9 = pnand %p931_p7, %p330_p8 }
  0x21   : > { %s337_s13 = sand.u32 (!%p331_p9), 1, %s1058_s21   ;;  %s934_s14 = sshll.u32 (!%p331_p9), %s1120_s24, 1  ;;  %v1068_v18 = vmov (!%p331_p9), 0   ;;  %vm513_vm0 = vcmask (!%p331_p9), 130048   ;;  %v1043_v19 = vld [vmem:[%s1244_s0 + $0x4] ss:$8 sps:$4 sm:$0xff] (!%p331_p9)   ;;  %v655_v8 = vlaneseq (!%p331_p9) }
  0x22   : > { %334 = sbr.rel (%p331_p9) target bundleno = 451 (0x1c3), region = 70  ;;  %p381_p10 = scmp.lt.s32.totalorder (!%p331_p9), %s934_s14, 3  ;;  %630 = vmatprep.mubr.bf16.mxu1 (!%p331_p9), %v1068_v18  ;;  %958 = vmatprep.mubr.msk.bf16.mxu0 (!%p331_p9), %vm513_vm0, %v1043_v19  ;;  %vm591_vm1 = vcmask (!%p331_p9), 1043456   ;;  %v1037_v33 = vld [vmem:[%s1245_s1] sm:$0xff] (!%p331_p9)   ;;  %vm587_vm2 = vcmask (!%p331_p9), 64512   ;;  %vm701_vm7 = vcmask (!%p331_p9), 31744  }
  0x23   : > { %s985_s15 = smul.u32 (!%p331_p9), 144, %s337_s13  ;;  %v1041_v43 = vld [vmem:[%s1244_s0] ss:$8 sps:$4 sm:$0xff] (!%p331_p9)   ;;  %s932_s9 = sshll.u32 (!%p331_p9), %s337_s13, 4  ;;  %v656_v10 = vand.u32 (!%p331_p9), 127, %v655_v8 }
  0x24   : > { %s1205_s10 = scalar_lea.vmem (!%p331_p9), [#allocation4], %s932_s9  ;;  %s1209_s21 = scalar_lea.vmem (!%p331_p9), [#allocation3], %s932_s9 }
  0x25   : > { %s1174_s18 = scalar_lea.vmem (!%p331_p9), [#allocation2], %s985_s15  ;;  %p388_p11 = scmp.lt.s32.totalorder (!%p331_p9), %s1120_s24, 1  ;;  %vm673_vm3 = vcmp.eq.s32.totalorder (!%p331_p9), %v656_v10, 0  ;;  %vm676_vm4 = vcmp.eq.s32.totalorder (!%p331_p9), %v656_v10, 1  ;;  %vm695_vm5 = vcmp.eq.s32.totalorder (!%p331_p9), %v656_v10, 2  ;;  %vm698_vm6 = vcmp.eq.s32.totalorder (!%p331_p9), %v656_v10, 3 }
  0x26   : > { %v1011_v20 = vld [vmem:[%s1174_s18 + $0x4] ss:$8 sps:$4 sm:$0xff] (!%p331_p9)   ;;  %v1013_v21 = vld [vmem:[%s1174_s18] ss:$8 sps:$4 sm:$0xff] (!%p331_p9)   ;;  %v1014_v22 = vld [vmem:[%s1174_s18 + $0x14] ss:$8 sps:$4 sm:$0xff] (!%p331_p9)  }
  0x27   : > { %517 = vmatprep.subr.bf16.mxu0 (!%p331_p9), %v1011_v20  ;;  %v1016_v23 = vld [vmem:[%s1174_s18 + $0x10] ss:$8 sps:$4 sm:$0xff] (!%p331_p9)   ;;  %v1017_v24 = vld [vmem:[%s1174_s18 + $0x24] ss:$8 sps:$4 sm:$0xff] (!%p331_p9)   ;;  %v1019_v25 = vld [vmem:[%s1174_s18 + $0x20] ss:$8 sps:$4 sm:$0xff] (!%p331_p9)  }
  0x28   : > { %518 = vmatpush1.bf16.msra.mxu0 (!%p331_p9), %v1013_v21  ;;  %v1020_v26 = vld [vmem:[%s1174_s18 + $0x34] ss:$8 sps:$4 sm:$0xff] (!%p331_p9)   ;;  %v1022_v30 = vld [vmem:[%s1174_s18 + $0x30] ss:$8 sps:$4 sm:$0xff] (!%p331_p9)   ;;  %v1023_v31 = vld [vmem:[%s1174_s18 + $0x44] ss:$8 sps:$4 sm:$0xff] (!%p331_p9)  }
  0x29   : > { %s1256_s14 = smov (!%p381_p10, %s934_s14), 3  ;;  %519 = vmatprep.subr.bf16.mxu0 %v1014_v22  ;;  %v1025_v34 = vld [vmem:[%s1174_s18 + $0x40] ss:$8 sps:$4 sm:$0xff]   ;;  %v1026_v35 = vld [vmem:[%s1174_s18 + $0x54] ss:$8 sps:$4 sm:$0xff]   ;;  %s982_s16 = sshll.u32 (%p1135_p5), %s1120_s24, 3 }
  0x2a   : > { %s935_s19 = sshll.u32 %s1256_s14, 2  ;;  %v1028_v36 = vld [vmem:[%s1174_s18 + $0x50] ss:$8 sps:$4 sm:$0xff]   ;;  %v1029_v37 = vld [vmem:[%s1174_s18 + $0x64] ss:$8 sps:$4 sm:$0xff]  }
  0x2b   : > { %s384_s26 = scalar_lea.vmem %s1247_s3, %s935_s19  ;;  %v1031_v38 = vld [vmem:[%s1174_s18 + $0x60] ss:$8 sps:$4 sm:$0xff]   ;;  %v1034_v39 = vld [vmem:[%s1174_s18 + $0x74] ss:$8 sps:$4 sm:$0xff]   ;;  %v1036_v40 = vld [vmem:[%s1174_s18 + $0x70] ss:$8 sps:$4 sm:$0xff]   ;;  %s722_s19 = scalar_lea.vmem (%p1135_p5), %s1248_s4, %s982_s16 }
  0x2c   : > { %520 = vmatpush1.bf16.msra.mxu0 %v1016_v23  ;;  %v576_v27 = vld [vmem:[%s384_s26] sm:$0xff]  ;;  %s389_s11 = scalar_select %p388_p11, %s1120_s24, 1 }
  0x2d   : > { %521 = vmatprep.subr.bf16.mxu0 %v1017_v24  ;;  %v963_v28 = vcombine.high %v576_v27, %v576_v27  ;;  %v962_v29 = vcombine.low %v576_v27, %v576_v27  ;;  %v1038_v41 = vld [vmem:[%s1174_s18 + $0x84] ss:$8 sps:$4 sm:$0xff]   ;;  %v1040_v42 = vld [vmem:[%s1174_s18 + $0x80] ss:$8 sps:$4 sm:$0xff]  }
  0x2e   : > { %s977_s12 = sshll.u32 %s389_s11, 4 }
  0x2f   : > { %964 = vmatprep.subr.msk.bf16.mxu1 %vm591_vm1, %v963_v28  ;;  %v593_v32 = vsel %vm591_vm1, %v962_v29, 0  ;;  %s392_s15 = scalar_lea.vmem %s1250_s6, %s977_s12 }
  0x30   : > { %522 = vmatpush1.bf16.msra.mxu0 %v1019_v25  ;;  %599 = vmatpush1.bf16.msra.mxu1 %v593_v32 }
  0x31   : > { %523 = vmatprep.subr.bf16.mxu0 %v1020_v26 }
  0x33   : > { %965 = vmatmul.mubr.msk.bf16.vlgmr.msra.gmra.mrb[0].mxu1 %vm587_vm2, %v1037_v33 }
  0x34   : > { %524 = vmatpush1.bf16.msra.mxu0 %v1022_v30 }
  0x35   : > { %525 = vmatprep.subr.bf16.mxu0 %v1023_v31 }
  0x38   : > { %526 = vmatpush1.bf16.msra.mxu0 %v1025_v34 }
  0x39   : > { %527 = vmatprep.subr.bf16.mxu0 %v1026_v35 }
  0x3c   : > { %528 = vmatpush1.bf16.msra.mxu0 %v1028_v36 }
  0x3d   : > { %529 = vmatprep.subr.bf16.mxu0 %v1029_v37 }
  0x40   : > { %530 = vmatpush1.bf16.msra.mxu0 %v1031_v38 }
  0x41   : > { %531 = vmatprep.subr.bf16.mxu0 %v1034_v39 }
  0x44   : > { %532 = vmatpush1.bf16.msra.mxu0 %v1036_v40 }
  0x45   : > { %533 = vmatprep.subr.bf16.mxu0 %v1038_v41 }
  0x48   : > { %534 = vmatpush1.bf16.msra.mxu0 %v1040_v42 }
  0x4b   : > { %550 = vmatmul.mubr.bf16.vlgmr.msra.gmra.mrb[0].mxu0 %v1041_v43 }
 0x106   : > { %v632_v44 = vpop.f32.mrb[0].mxu1 }
 0x107   : > { %v634_v45 = vpop.f32.mrb[1].mxu1  ;;  %v685_v46 = vmul.f32 %v632_v44, %v632_v44 }
 0x108   : > { %v980_v47 = vpack.c.bf16 %v634_v45, %v632_v44  ;;  %v636_v48 = vpop.f32.mrb[2].mxu1  ;;  %v679_v49 = vadd.f32 %v634_v45, %v632_v44  ;;  %v686_v50 = vmul.f32 %v634_v45, %v634_v45 }
 0x109   : > { %v638_v51 = vpop.f32.mrb[3].mxu1  ;;  %v687_v52 = vmul.f32 %v636_v48, %v636_v48 }
 0x10a   : > { %v981_v53 = vpack.c.bf16 %v638_v51, %v636_v48  ;;  %653 = vst [vmem:[%s1205_s10] sm:$0xff] %v980_v47  ;;  %v688_v54 = vmul.f32 %v638_v51, %v638_v51  ;;  %680 = vadd.xlane.f32.xlu0 %v679_v49  ;;  %v682_v55 = vadd.f32 %v638_v51, %v636_v48 }
 0x10b   : > { %v689_v56 = vadd.f32 %v686_v50, %v685_v46 }
 0x10c   : > { %654 = vst [vmem:[%s1205_s10 + $0x8] sm:$0xff] %v981_v53  ;;  %683 = vadd.xlane.f32.xlu1 %v682_v55  ;;  %v692_v57 = vadd.f32 %v688_v54, %v687_v52 }
 0x11e   : > { %v551_v58 = vpop.f32.mrb[0].mxu0 }
 0x11f   : > { %v553_v59 = vpop.f32.mrb[1].mxu0  ;;  %v663_v60 = vmul.f32 %v551_v58, %v551_v58 }
 0x120   : > { %v978_v61 = vpack.c.bf16 %v553_v59, %v551_v58  ;;  %v555_v62 = vpop.f32.mrb[2].mxu0  ;;  %v657_v63 = vadd.f32 %v553_v59, %v551_v58  ;;  %v664_v0 = vmul.f32 %v553_v59, %v553_v59 }
 0x121   : > { %v557_v1 = vpop.f32.mrb[3].mxu0  ;;  %v665_v2 = vmul.f32 %v555_v62, %v555_v62 }
 0x122   : > { %v979_v3 = vpack.c.bf16 %v557_v1, %v555_v62  ;;  %572 = vst [vmem:[%s1209_s21] sm:$0xff] %v978_v61  ;;  %v666_v4 = vmul.f32 %v557_v1, %v557_v1  ;;  %658 = vadd.xlane.f32.xlu0 %v657_v63  ;;  %v667_v5 = vadd.f32 %v664_v0, %v663_v60 }
 0x123   : > { %v660_v6 = vadd.f32 %v557_v1, %v555_v62 }
 0x124   : > { %573 = vst [vmem:[%s1209_s21 + $0x8] sm:$0xff] %v979_v3  ;;  %668 = vadd.xlane.f32.xlu1 %v667_v5  ;;  %v670_v7 = vadd.f32 %v666_v4, %v665_v2 }
 0x126   : > { %661 = vadd.xlane.f32.xlu0 %v660_v6 }
 0x128   : > { %671 = vadd.xlane.f32.xlu1 %v670_v7 }
 0x129   : > { %v752_v26 = vld [vmem:[%s1209_s21] sm:$0xff] (%p1135_p5) }
 0x12a   : > { %690 = vadd.xlane.f32.xlu0 %v689_v56  ;;  %753 = vst [vmem:[%s722_s19] sm:$0xff] (%p1135_p5), %v752_v26 }
 0x12b   : > { %v754_v27 = vld [vmem:[%s1209_s21 + $0x8] sm:$0xff] (%p1135_p5) }
 0x12c   : > { %693 = vadd.xlane.f32.xlu1 %v692_v57  ;;  %755 = vst [vmem:[%s722_s19 + $0x10] sm:$0xff] (%p1135_p5), %v754_v27 }
 0x197   : > { %v681_v9 = vpop.xlane.xlu0 %680 }
 0x199   : > { %v684_v11 = vpop.xlane.xlu1 %683 }
 0x1af   : > { %v659_v12 = vpop.xlane.xlu0 %658 }
 0x1b0   : > { %v674_v13 = vsel %vm673_vm3, %v659_v12, 0.0 }
 0x1b1   : > { %v669_v14 = vpop.xlane.xlu1 %668 }
 0x1b2   : > { %v677_v16 = vsel %vm676_vm4, %v669_v14, %v674_v13 }
 0x1b3   : > { %v662_v15 = vpop.xlane.xlu0 %661  ;;  %v696_v20 = vsel %vm695_vm5, %v681_v9, %v677_v16 }
 0x1b4   : > { %v675_v17 = vsel %vm673_vm3, %v662_v15, 0.0 }
 0x1b5   : > { %v672_v18 = vpop.xlane.xlu1 %671  ;;  %719 = sbr.rel (!%p1135_p5) target bundleno = 444 (0x1bc), region = 78 }
 0x1b6   : > { %v678_v19 = vsel %vm676_vm4, %v672_v18, %v675_v17 }
 0x1b7   : > { %v691_v21 = vpop.xlane.xlu0 %690  ;;  %v697_v24 = vsel %vm695_vm5, %v684_v11, %v678_v19 }
 0x1b8   : > { %v699_v22 = vsel %vm698_vm6, %v691_v21, %v696_v20 }
 0x1b9   : > { %702 = vst.msk [vmem:[%s392_s15] sm:$0xff] %vm701_vm7, %v699_v22  ;;  %v694_v23 = vpop.xlane.xlu1 %693 }
 0x1ba   : > { %v700_v25 = vsel %vm698_vm6, %v694_v23, %v697_v24 }
 0x1bb   : > { %703 = vst.msk [vmem:[%s392_s15 + $0x8] sm:$0xff] %vm701_vm7, %v700_v25 }
 0x1bc PF: > { %761 = sbr.rel (!%p1135_p5) target bundleno = 451 (0x1c3), region = 116  ;;  %s983_s20 = sshll.u32 (%p1135_p5), %s1120_s24, 3  ;;  %v794_v28 = vld [vmem:[%s1205_s10] sm:$0xff] (%p1135_p5)  ;;  %v796_v29 = vld [vmem:[%s1205_s10 + $0x8] sm:$0xff] (%p1135_p5) }
 0x1bd   : > { %s764_s27 = scalar_lea.vmem (%p1135_p5), %s1249_s5, %s983_s20 }
 0x1be   : > { %795 = vst [vmem:[%s764_s27] sm:$0xff] (%p1135_p5), %v794_v28  ;;  %797 = vst [vmem:[%s764_s27 + $0x10] sm:$0xff] (%p1135_p5), %v796_v29 }
 0x1c3 PF: > { %p14_p12 = scmp.ge.s32.totalorder %s1123_s25, 4   ;;  %s1252_s21 = smov %s1062_s22 }
 0x1c4   : > { %s1253_s22 = smov %s1133_s28  ;;  %s1254_s23 = smov %s1123_s25 }
 0x1c5   :  { %16 = sbr.rel (!%p14_p12) target bundleno = 2 (0x2), region = 212 }

// kernel: simple_block_forward.5
= control target key start
LH: loop header
LB: loop body
LE: loop exit
PB: predicated region body
PF: predicated region fallthrough
CT: control target
= control target key end

     0   :  { %s553_s12 = smov 0   ;;  %s555_s13 = smov 0   ;;  %s636_s0 = inlined_call_operand.vmem [shape: f32[16,4], index: 0, kind: input, shape index: {}]   ;;  %s637_s1 = inlined_call_operand.vmem [shape: bf16[16,512], index: 1, kind: input, shape index: {}]   ;;  %s638_s2 = inlined_call_operand.vmem [shape: bf16[16,512], index: 2, kind: input, shape index: {}]   ;;  %s639_s3 = inlined_call_operand.vmem [shape: f32[16,512], index: 3, kind: output, shape index: {}]  }
   0x1   :  { %s557_s14 = smov 0  }
   0x2 LB: > { %s449_s15 = sadd.s32 4294967295, %s527_s14   ;;  %s570_s16 = sadd.s32 1, %s527_s14   ;;  %s527_s14 = sphi %s557_s14, %s644_s14   ;;  %s523_s13 = sphi %s555_s13, %s643_s13   ;;  %s519_s12 = sphi %s553_s12, %s642_s12  }
   0x3   : > { %s38_s17 = ssub.s32 %s527_s14, %s570_s16  ;;  %s41_s18 = sadd.s32 1, %s523_s13 }
   0x4   : > { %p39_p0 = scmp.eq.s32.totalorder %s38_s17, 0  ;;  %p48_p1 = scmp.ne.s32.totalorder %s523_s13, %s519_s12 }
   0x5   : > { %p49_p2 = scmp.eq.s32.totalorder %s527_s14, 0  ;;  %p104_p3 = scmp.eq.s32.totalorder %s449_s15, 1 }
   0x6   : > { %s581_s19 = scalar_select %p39_p0, %s523_s13, %s41_s18  }
   0x7   : > { %p583_p4 = por %p49_p2, %p48_p1  ;;  %p587_p5 = por %p104_p3, %p48_p1 }
   0x8   : > { %p452_p6 = scmp.ge.s32.totalorder %s527_s14, 2 }
   0xa   : > { %129 = sbr.rel (%p452_p6) target bundleno = 31 (0x1f), region = 20 }
  0x11   : > { %132 = sbr.rel (!%p583_p4) target bundleno = 24 (0x18), region = 24  ;;  %s134_s22 = sand.u32 (%p583_p4), 1, %s523_s13  }
  0x12   : > { %s468_s23 = sshll.u32 (%p583_p4), %s527_s14, 3  ;;  %s453_s24 = sshll.u32 (%p583_p4), %s134_s22, 4 }
  0x13   : > { %s139_s27 = scalar_lea.vmem (%p583_p4), %s637_s1, %s468_s23  ;;  %s136_s28 = scalar_lea.vmem (%p583_p4), [#allocation2], %s453_s24 }
  0x14   : > { %v169_v0 = vld [vmem:[%s139_s27] sm:$0xff] (%p583_p4)  ;;  %v171_v1 = vld [vmem:[%s139_s27 + $0x10] sm:$0xff] (%p583_p4) }
  0x15   : > { %170 = vst [vmem:[%s136_s28] sm:$0xff] (%p583_p4), %v169_v0  ;;  %172 = vst [vmem:[%s136_s28 + $0x8] sm:$0xff] (%p583_p4), %v171_v1 }
  0x18 PF: > { %178 = sbr.rel (!%p583_p4) target bundleno = 31 (0x1f), region = 62  ;;  %s180_s29 = sand.u32 (%p583_p4), 1, %s523_s13  }
  0x19   : > { %s469_s30 = sshll.u32 (%p583_p4), %s527_s14, 3  ;;  %s456_s4 = sshll.u32 (%p583_p4), %s180_s29, 4 }
  0x1a   : > { %s185_s7 = scalar_lea.vmem (%p583_p4), %s638_s2, %s469_s30  ;;  %s182_s8 = scalar_lea.vmem (%p583_p4), [#allocation3], %s456_s4 }
  0x1b   : > { %v215_v2 = vld [vmem:[%s185_s7] sm:$0xff] (%p583_p4)  ;;  %v217_v3 = vld [vmem:[%s185_s7 + $0x10] sm:$0xff] (%p583_p4) }
  0x1c   : > { %216 = vst [vmem:[%s182_s8] sm:$0xff] (%p583_p4), %v215_v2  ;;  %218 = vst [vmem:[%s182_s8 + $0x8] sm:$0xff] (%p583_p4), %v217_v3 }
  0x1f PF: > { %p459_p7 = scmp.ge.s32.totalorder %s527_s14, 1  ;;  %p223_p8 = scmp.lt.s32.totalorder %s527_s14, 3 }
  0x21   : > { %p224_p9 = pnand %p459_p7, %p223_p8 }
  0x22   : > { %v266_v4 = vld [vmem:[%s636_s0] sm:$0xff] (!%p224_p9)  ;;  %v529_v5 = vmov (!%p224_p9), 2   ;;  %v530_v6 = vmov (!%p224_p9), 0   ;;  %v267_v7 = vld [vmem:[%s636_s0 + $0x8] sm:$0xff] (!%p224_p9)  ;;  %v531_v8 = vmov (!%p224_p9), 1   ;;  %v532_v9 = vmov (!%p224_p9), 3  }
  0x23   : > { %227 = sbr.rel (%p224_p9) target bundleno = 194 (0xc2), region = 100  ;;  %500 = vset.pattern.permute.xlu1 (!%p224_p9), %v529_v5  ;;  %499 = vset.pattern.permute.xlu0 (!%p224_p9), %v530_v6  ;;  %s230_s18 = sand.u32 (!%p224_p9), 1, %s519_s12  }
  0x24   : > { %307 = vperm.xlu1 (!%p224_p9), %500, %v266_v4   ;;  %282 = vperm.xlu0 (!%p224_p9), %499, %v266_v4   ;;  %s460_s20 = sshll.u32 (!%p224_p9), %s230_s18, 4  ;;  %s462_s24 = sshll.u32 (!%p224_p9), %s230_s18, 5 }
  0x25   : > { %s232_s22 = scalar_lea.vmem (!%p224_p9), [#allocation2], %s460_s20  ;;  %s239_s23 = scalar_lea.vmem (!%p224_p9), [#allocation3], %s460_s20 }
  0x26   : > { %v268_v14 = vld [vmem:[%s232_s22] sm:$0xff] (!%p224_p9)  ;;  %v269_v15 = vld [vmem:[%s232_s22 + $0x8] sm:$0xff] (!%p224_p9)  ;;  %s262_s25 = scalar_lea.vmem (!%p224_p9), [#allocation4], %s462_s24 }
  0x27   : > { %v274_v16 = vld [vmem:[%s239_s23] sm:$0xff] (!%p224_p9)  ;;  %v275_v17 = vld [vmem:[%s239_s23 + $0x8] sm:$0xff] (!%p224_p9)  ;;  %v270_v18 = vunpack.c.l.bf16 (!%p224_p9), %v268_v14  ;;  %v271_v19 = vunpack.c.h.bf16 (!%p224_p9), %v268_v14  ;;  %v272_v20 = vunpack.c.l.bf16 (!%p224_p9), %v269_v15  ;;  %v273_v21 = vunpack.c.h.bf16 (!%p224_p9), %v269_v15 }
  0x28   : > { %311 = vperm.xlu1 (!%p224_p9), %500, %v267_v7   ;;  %287 = vperm.xlu0 (!%p224_p9), %499, %v267_v7   ;;  %v276_v22 = vunpack.c.l.bf16 (!%p224_p9), %v274_v16  ;;  %v277_v23 = vunpack.c.h.bf16 (!%p224_p9), %v274_v16  ;;  %v278_v24 = vunpack.c.l.bf16 (!%p224_p9), %v275_v17  ;;  %v279_v25 = vunpack.c.h.bf16 (!%p224_p9), %v275_v17 }
  0x2a   : > { %s470_s12 = sshll.u32 (%p587_p5), %s449_s15, 4 }
  0x2b   : > { %s351_s28 = scalar_lea.vmem (%p587_p5), %s639_s3, %s470_s12 }
  0x2c   : > { %502 = vset.pattern.permute.xlu1 %v531_v8  ;;  %501 = vset.pattern.permute.xlu0 %v531_v8 }
  0x2d   : > { %299 = vperm.xlu1 %502, %v267_v7   ;;  %295 = vperm.xlu0 %501, %v266_v4  }
  0x31   : > { %503 = vset.pattern.permute.xlu1 %v532_v9  ;;  %504 = vset.pattern.permute.xlu0 %v532_v9 }
  0x32   : > { %319 = vperm.xlu1 %503, %v266_v4   ;;  %323 = vperm.xlu0 %504, %v267_v7  }
  0xa3   : > { %v308_v10 = vpop.permute.xlu1 %307  ;;  %v283_v11 = vpop.permute.xlu0 %282 }
  0xa4   : > { %v290_v28 = vmul.f32 %v283_v11, %v270_v18  ;;  %v291_v29 = vmul.f32 %v283_v11, %v271_v19  ;;  %v314_v32 = vmul.f32 %v308_v10, %v276_v22  ;;  %v315_v33 = vmul.f32 %v308_v10, %v277_v23 }
  0xa7   : > { %v312_v12 = vpop.permute.xlu1 %311  ;;  %v288_v13 = vpop.permute.xlu0 %287 }
  0xa8   : > { %v292_v30 = vmul.f32 %v288_v13, %v272_v20  ;;  %v293_v31 = vmul.f32 %v288_v13, %v273_v21  ;;  %v316_v34 = vmul.f32 %v312_v12, %v278_v24  ;;  %v317_v35 = vmul.f32 %v312_v12, %v279_v25 }
  0xac   : > { %v300_v26 = vpop.permute.xlu1 %299  ;;  %v296_v27 = vpop.permute.xlu0 %295 }
  0xad   : > { %v304_v36 = vadd.f32 %v300_v26, %v292_v30  ;;  %v305_v37 = vadd.f32 %v300_v26, %v293_v31  ;;  %v302_v38 = vadd.f32 %v296_v27, %v290_v28  ;;  %v303_v39 = vadd.f32 %v296_v27, %v291_v29 }
  0xb1   : > { %v320_v40 = vpop.permute.xlu1 %319  ;;  %v324_v41 = vpop.permute.xlu0 %323 }
  0xb2   : > { %v326_v42 = vadd.f32 %v320_v40, %v314_v32  ;;  %v327_v43 = vadd.f32 %v320_v40, %v315_v33  ;;  %v328_v44 = vadd.f32 %v324_v41, %v316_v34  ;;  %v329_v45 = vadd.f32 %v324_v41, %v317_v35 }
  0xb3   : > { %348 = sbr.rel (!%p587_p5) target bundleno = 194 (0xc2), region = 112 }
  0xb4   : > { %v330_v46 = vadd.f32 %v326_v42, %v302_v38  ;;  %v331_v47 = vadd.f32 %v327_v43, %v303_v39  ;;  %v332_v48 = vadd.f32 %v328_v44, %v304_v36  ;;  %v333_v49 = vadd.f32 %v329_v45, %v305_v37 }
  0xb6   : > { %v334_v50 = vmax.f32 %v330_v46, 0.0  ;;  %v335_v51 = vmax.f32 %v331_v47, 0.0  ;;  %v336_v52 = vmax.f32 %v332_v48, 0.0  ;;  %v337_v53 = vmax.f32 %v333_v49, 0.0 }
  0xb8   : > { %338 = vst [vmem:[%s262_s25] sm:$0xff] %v334_v50  ;;  %339 = vst [vmem:[%s262_s25 + $0x8] sm:$0xff] %v335_v51 }
  0xb9   : > { %340 = vst [vmem:[%s262_s25 + $0x10] sm:$0xff] %v336_v52  ;;  %341 = vst [vmem:[%s262_s25 + $0x18] sm:$0xff] %v337_v53 }
  0xbf   : > { %v364_v54 = vld [vmem:[%s262_s25] sm:$0xff]  ;;  %v366_v55 = vld [vmem:[%s262_s25 + $0x8] sm:$0xff] }
  0xc0   : > { %v368_v56 = vld [vmem:[%s262_s25 + $0x10] sm:$0xff]  ;;  %v370_v57 = vld [vmem:[%s262_s25 + $0x18] sm:$0xff]  ;;  %365 = vst [vmem:[%s351_s28] sm:$0xff] %v364_v54  ;;  %367 = vst [vmem:[%s351_s28 + $0x8] sm:$0xff] %v366_v55 }
  0xc1   : > { %369 = vst [vmem:[%s351_s28 + $0x20] sm:$0xff] %v368_v56  ;;  %371 = vst [vmem:[%s351_s28 + $0x28] sm:$0xff] %v370_v57 }
  0xc2 PF: > { %p10_p10 = scmp.ge.s32.totalorder %s570_s16, 4   ;;  %s642_s12 = smov %s523_s13 }
  0xc3   : > { %s643_s13 = smov %s581_s19  ;;  %s644_s14 = smov %s570_s16 }
  0xc4   :  { %12 = sbr.rel (!%p10_p10) target bundleno = 2 (0x2), region = 174 }

</bundles_post_ra>
